<compile_context>
chip_gen: v7x
topology: tpu7x:2x2x1
jax: 0.10.0
libtpu: 0.0.40
codegen_flags: <defaults>
</compile_context>

<pallas_src>
import math

import numpy as np
import jax
import jax.numpy as jnp
from jax import lax
from jax.experimental import pallas as pl
from jax.experimental.pallas import tpu as pltpu


def _cdiv(a, b):
    return (a + b - 1) // b


# ---------------------------------------------------------------------------
# Pallas kernel: one fused matmul + bias, lane-dense output.
#   w_ref : (M, Kc)  bf16   fused phase/complex/tap weights (constant across grid)
#   a_ref : (Kc, TN) bf16   im2col slab column tile (lanes = flattened spatial)
#   b_ref : (M, 1)   f32    fused bias (broadcast over lanes)
#   o_ref : (M, TN)  f32
# ---------------------------------------------------------------------------
def _matmul_bias_kernel(w_ref, a_ref, b_ref, o_ref):
    acc = lax.dot_general(
        w_ref[...], a_ref[...],
        dimension_numbers=(((1,), (0,)), ((), ())),
        preferred_element_type=jnp.float32)
    o_ref[...] = (acc + b_ref[...]).astype(o_ref.dtype)


# ---------------------------------------------------------------------------
# Wrapper: polyphase decomposition, weight fusion, im2col (layout plumbing only)
# ---------------------------------------------------------------------------
def cconv_transpose2d(x, w_real, w_imag, b_real, b_imag, *,
                      stride, padding=0, output_padding=0):
    N, Cin, H, W, _ = x.shape
    Cout, K = w_real.shape[1], w_real.shape[2]
    s, p, op = stride, padding, output_padding

    Ho = (H - 1) * s - 2 * p + K + op
    Wo = (W - 1) * s - 2 * p + K + op
    C2i, C2o = 2 * Cin, 2 * Cout

    # ---- static polyphase bookkeeping (plain Python ints) -------------------
    # Output position o = phi + s*t receives taps k = k0(phi) + s*u from input
    # index i = t + d(phi) - u, where k0 = (phi+p) % s, d = (phi+p) // s.
    k0s = [(phi + p) % s for phi in range(s)]
    ds = [(phi + p) // s for phi in range(s)]
    n_taps = [max(0, _cdiv(K - k0, s)) for k0 in k0s]
    L = max(0, max(n_taps[phi] - 1 - ds[phi] for phi in range(s)))  # left zero-pad
    U = L + max(ds) + 1                                             # uniform taps/phase
    Hos, Wos = _cdiv(Ho, s), _cdiv(Wo, s)                           # per-phase out sizes
    Rh = max(0, Hos + U - 1 - L - H)                                # right zero-pad
    Rw = max(0, Wos + U - 1 - L - W)

    # per-phase tap index table + validity mask (identical for H and W axes)
    k_idx = np.zeros((s, U), dtype=np.int32)
    k_ok = np.zeros((s, U), dtype=np.float32)
    for phi in range(s):
        for v in range(U):
            k = k0s[phi] + s * (L + ds[phi] - v)
            if 0 <= k < K:
                k_idx[phi, v] = k
                k_ok[phi, v] = 1.0

    # ---- fused weights: complex -> channels, phases -> rows, taps -> contraction
    # w_comb[kh, kw] : (2Cin, 2Cout) = [[wr, wi], [-wi, wr]]
    wr = jnp.transpose(w_real, (2, 3, 0, 1))                 # (K, K, Cin, Cout)
    wi = jnp.transpose(w_imag, (2, 3, 0, 1))
    w_comb = jnp.concatenate([
        jnp.concatenate([wr,  wi], axis=-1),                 # rows: real input chans
        jnp.concatenate([-wi, wr], axis=-1),                 # rows: imag input chans
    ], axis=2)                                               # (K, K, 2Cin, 2Cout)

    kh = jnp.asarray(k_idx)
    ok = jnp.asarray(k_ok)
    hw = w_comb[kh[:, None, :, None], kh[None, :, None, :]]  # (s,s,U,U,2Cin,2Cout)
    hw = hw * ok[:, None, :, None, None, None] * ok[None, :, None, :, None, None]

    M = s * s * C2o
    Kc = U * U * C2i
    w_mat = jnp.transpose(hw, (0, 1, 5, 2, 3, 4)).reshape(M, Kc)   # (ph,pw,co2)x(vh,vw,ci2)

    b_comb = jnp.concatenate([b_real - b_imag, b_real + b_imag])   # (2Cout,)
    b_full = jnp.tile(b_comb, s * s).reshape(M, 1).astype(jnp.float32)

    # ---- im2col slab on the ORIGINAL (un-stuffed) input ----------------------
    x_c = jnp.concatenate([x[..., 0], x[..., 1]], axis=1)    # (N, 2Cin, H, W)
    x_pad = jnp.pad(x_c, ((0, 0), (0, 0), (L, Rh), (L, Rw)))
    slabs = [x_pad[:, :, vh:vh + Hos, vw:vw + Wos]
             for vh in range(U) for vw in range(U)]          # U*U x (N, 2Cin, Hos, Wos)
    a = jnp.stack(slabs, axis=0).reshape(U, U, N, C2i, Hos, Wos)
    a = jnp.transpose(a, (0, 1, 3, 2, 4, 5)).reshape(Kc, N * Hos * Wos)

    # ---- pad to TPU-friendly tiles, cast MXU operands to bf16 ----------------
    Ntot = N * Hos * Wos
    nt128 = _cdiv(Ntot, 128) * 128
    TN = 512 if nt128 >= 1024 else (256 if nt128 >= 256 else 128)
    NT_pad = _cdiv(Ntot, TN) * TN
    M_pad = _cdiv(M, 16) * 16
    Kc_pad = _cdiv(Kc, 16) * 16

    a_p = jnp.pad(a, ((0, Kc_pad - Kc), (0, NT_pad - Ntot))).astype(jnp.bfloat16)
    w_p = jnp.pad(w_mat, ((0, M_pad - M), (0, Kc_pad - Kc))).astype(jnp.bfloat16)
    b_p = jnp.pad(b_full, ((0, M_pad - M), (0, 0)))

    out = pl.pallas_call(
        _matmul_bias_kernel,
        out_shape=jax.ShapeDtypeStruct((M_pad, NT_pad), jnp.float32),
        grid=(NT_pad // TN,),
        in_specs=[
            pl.BlockSpec((M_pad, Kc_pad), lambda j: (0, 0)),   # tiny constant weights
            pl.BlockSpec((Kc_pad, TN), lambda j: (0, j)),      # im2col column tile
            pl.BlockSpec((M_pad, 1), lambda j: (0, 0)),        # fused bias
        ],
        out_specs=pl.BlockSpec((M_pad, TN), lambda j: (0, j)),
        compiler_params=pltpu.CompilerParams(
            dimension_semantics=("parallel",)),                # shards across TCs (v7x)
    )(w_p, a_p, b_p)

    # ---- crop, undo phase fusion (pixel-shuffle), back to PyTorch layout -----
    out = out[:M, :Ntot].reshape(s, s, 2, Cout, N, Hos, Wos)   # (ph,pw,part,co,n,th,tw)
    out = jnp.transpose(out, (4, 3, 5, 0, 6, 1, 2))            # (N,Cout,Hos,s,Wos,s,2)
    out = out.reshape(N, Cout, Hos * s, Wos * s, 2)[:, :, :Ho, :Wo, :]
    return out.astype(x.dtype)


# ---------------------------------------------------------------------------
# Pure-JAX reference (XLA conv path) for correctness checking
# ---------------------------------------------------------------------------
def _convt_ref(x_nchw, w_t, b, s, p, op, K):
    w = jnp.transpose(w_t[:, :, ::-1, ::-1], (1, 0, 2, 3))   # OIHW, flipped
    y = lax.conv_general_dilated(
        x_nchw, w, window_strides=(1, 1),
        padding=((K - 1 - p, K - 1 - p + op), (K - 1 - p, K - 1 - p + op)),
        lhs_dilation=(s, s),
        dimension_numbers=('NCHW', 'OIHW', 'NCHW'))
    return y + b[None, :, None, None]


def cconv_transpose2d_ref(x, w_real, w_imag, b_real, b_imag, *,
                          stride, padding=0, output_padding=0):
    K = w_real.shape[2]
    xr, xi = x[..., 0], x[..., 1]
    rr = _convt_ref(xr, w_real, b_real, stride, padding, output_padding, K)
    ii = _convt_ref(xi, w_imag, b_imag, stride, padding, output_padding, K)
    ri = _convt_ref(xr, w_imag, b_imag, stride, padding, output_padding, K)
    ir = _convt_ref(xi, w_real, b_real, stride, padding, output_padding, K)
    return jnp.stack([rr - ii, ri + ir], axis=-1)


# ---------------------------------------------------------------------------
if __name__ == "__main__":
    # Module config (small, consistent with the forward pass)
    N, Cin, Cout = 2, 4, 4
    H = W = 16
    K, stride, padding, output_padding = 3, 2, 1, 1

    key = jax.random.PRNGKey(0)
    kx, kwr, kwi, kbr, kbi = jax.random.split(key, 5)

    # Deterministic parameter init (xavier_uniform weights, torch-style bias range)
    xav = (6.0 / ((Cin + Cout) * K * K)) ** 0.5
    w_real = jax.random.uniform(kwr, (Cin, Cout, K, K), jnp.float32, -xav, xav)
    w_imag = jax.random.uniform(kwi, (Cin, Cout, K, K), jnp.float32, -xav, xav)
    bbound = 1.0 / ((Cout * K * K) ** 0.5)
    b_real = jax.random.uniform(kbr, (Cout,), jnp.float32, -bbound, bbound)
    b_imag = jax.random.uniform(kbi, (Cout,), jnp.float32, -bbound, bbound)

    # Input: (N, Cin, H, W, 2) -- NCHW + complex-last, as the PyTorch module expects
    x = jax.random.normal(kx, (N, Cin, H, W, 2), jnp.float32)

    # The kernel feeds bf16 operands to the MXU (f32 accumulation).  Pre-round x / w
    # to bf16 so the f32 reference sees identical inputs and the comparison isolates
    # kernel correctness from the (intentional) bf16 quantization of the operands.
    q = lambda t: t.astype(jnp.bfloat16).astype(jnp.float32)
    xq, wrq, wiq = q(x), q(w_real), q(w_imag)

    out = cconv_transpose2d(xq, wrq, wiq, b_real, b_imag,
                            stride=stride, padding=padding,
                            output_padding=output_padding)
    out = jax.block_until_ready(out)

    ref = cconv_transpose2d_ref(xq, wrq, wiq, b_real, b_imag,
                                stride=stride, padding=padding,
                                output_padding=output_padding)
    ref = jax.block_until_ready(ref)

    Hout = (H - 1) * stride - 2 * padding + K + output_padding
    assert out.shape == (N, Cout, Hout, Hout, 2), out.shape
    assert jnp.allclose(out, ref, rtol=1e-3, atol=1e-3), \
        float(jnp.max(jnp.abs(out - ref)))

    print("KERNEL_OK")
</pallas_src>

<mosaic_0001>
module attributes {stable_mosaic.version = 11 : i64} {
  func.func @_matmul_bias_kernel(%arg0: i32, %arg1: memref<32x32xbf16, #tpu.memory_space<vmem>>, %arg2: memref<32x256xbf16, #tpu.memory_space<vmem>>, %arg3: memref<32x1xf32, #tpu.memory_space<vmem>>, %arg4: memref<32x256xf32, #tpu.memory_space<vmem>>) attributes {dimension_semantics = [#tpu.dimension_semantics<parallel>], iteration_bounds = array<i64: 2>, scalar_prefetch = 0 : i64, scratch_operands = 0 : i64, tpu.core_type = #tpu.core_type<tc>, window_params = [{pipeline_mode = #tpu.pipeline_mode<synchronous>, transform_indices = @transform_0, window_bounds = array<i64: 32, 32>}, {transform_indices = @transform_1, window_bounds = array<i64: 32, 256>}, {pipeline_mode = #tpu.pipeline_mode<synchronous>, transform_indices = @transform_2, window_bounds = array<i64: 32, 1>}, {transform_indices = @transform_3, window_bounds = array<i64: 32, 256>}]} {
    %c0 = arith.constant 0 : index
    %c0_0 = arith.constant 0 : index
    %0 = vector.load %arg1[%c0, %c0_0] : memref<32x32xbf16, #tpu.memory_space<vmem>>, vector<32x32xbf16>
    %c0_1 = arith.constant 0 : index
    %c0_2 = arith.constant 0 : index
    %1 = vector.load %arg2[%c0_1, %c0_2] : memref<32x256xbf16, #tpu.memory_space<vmem>>, vector<32x256xbf16>
    %cst = arith.constant dense<0.000000e+00> : vector<32x256xf32>
    %2 = tpu.matmul %0, %1, %cst {dimension_numbers = #tpu.dot_dimension_numbers<[1], [0], [0], [1], [0, 0, 1, 1], [], []>} : vector<32x32xbf16>, vector<32x256xbf16>, vector<32x256xf32> -> vector<32x256xf32>
    %c0_3 = arith.constant 0 : index
    %c0_4 = arith.constant 0 : index
    %3 = vector.load %arg3[%c0_3, %c0_4] : memref<32x1xf32, #tpu.memory_space<vmem>>, vector<32x1xf32>
    %4 = vector.broadcast %3 : vector<32x1xf32> to vector<32x256xf32>
    %5 = arith.addf %2, %4 : vector<32x256xf32>
    %c0_5 = arith.constant 0 : index
    %c0_6 = arith.constant 0 : index
    %6 = vector.load %arg4[%c0_5, %c0_6] : memref<32x256xf32, #tpu.memory_space<vmem>>, vector<32x256xf32>
    tpu.vector_store %arg4[%c0_5, %c0_6], %5 {strides = array<i32>} : memref<32x256xf32, #tpu.memory_space<vmem>>, vector<32x256xf32>,
    return
  }
  func.func @transform_0(%arg0: i32) -> (i32, i32) {
    %c0_i32 = arith.constant 0 : i32
    %c0_i32_0 = arith.constant 0 : i32
    %c0_i32_1 = arith.constant 0 : i32
    return %c0_i32, %c0_i32_0 : i32, i32
  }
  func.func @transform_1(%arg0: i32) -> (i32, i32) {
    %c0_i32 = arith.constant 0 : i32
    %c0_i32_0 = arith.constant 0 : i32
    return %c0_i32, %arg0 : i32, i32
  }
  func.func @transform_2(%arg0: i32) -> (i32, i32) {
    %c0_i32 = arith.constant 0 : i32
    %c0_i32_0 = arith.constant 0 : i32
    %c0_i32_1 = arith.constant 0 : i32
    return %c0_i32, %c0_i32_0 : i32, i32
  }
  func.func @transform_3(%arg0: i32) -> (i32, i32) {
    %c0_i32 = arith.constant 0 : i32
    %c0_i32_0 = arith.constant 0 : i32
    return %c0_i32, %arg0 : i32, i32
  }
}

</mosaic_0001>

<bundles_post_ra>
// kernel: tpu_custom_call.1
= control target key start
LH: loop header
LB: loop body
LE: loop exit
PB: predicated region body
PF: predicated region fallthrough
CT: control target
= control target key end

     0   :  { %8 = vsyncpa [#allocation3], 0  ;;  %s810_s0 = inlined_call_operand.vmem [shape: bf16[32,32], index: 0, kind: input, shape index: {}]   ;;  %s811_s1 = inlined_call_operand.hbm [shape: bf16[32,512], index: 1, kind: input, shape index: {}]   ;;  %s812_s2 = inlined_call_operand.vmem [shape: f32[32,1], index: 2, kind: input, shape index: {}]   ;;  %s813_s3 = inlined_call_operand.hbm [shape: f32[32,512], index: 3, kind: output, shape index: {}]  }
   0x1   :  { %10 = vsyncpa [#allocation3 + $0x1], 0 }
   0x2   :  { %11 = vsyncpa [#allocation4], 0 }
   0x3   :  { %13 = vsyncpa [#allocation4 + $0x1], 0  ;;  %s627_s12 = smov 0   ;;  %s629_s13 = smov 0  }
   0x4   :  { %s631_s14 = smov 0   ;;  %s633_s15 = smov 0  }
   0x5 LB: > { %s648_s16 = sadd.s32 4294967295, %s596_s15   ;;  %s409_s17 = sadd.s32 4294967294, %s596_s15   ;;  %s596_s15 = sphi %s633_s15, %s827_s15   ;;  %s592_s14 = sphi %s631_s14, %s826_s14   ;;  %s588_s13 = sphi %s629_s13, %s825_s13   ;;  %s584_s12 = sphi %s627_s12, %s824_s12  }
   0x6   : > { %s652_s18 = sadd.s32 1, %s596_s15   ;;  %s47_s19 = sadd.s32 1, %s592_s14 }
   0x7   : > { %s44_s20 = ssub.s32 %s596_s15, %s652_s18  ;;  %p54_p0 = scmp.ne.s32.totalorder %s592_s14, %s588_s13 }
   0x8   : > { %p45_p1 = scmp.eq.s32.totalorder %s44_s20, 0  ;;  %p55_p2 = scmp.eq.s32.totalorder %s596_s15, 0 }
   0x9   : > { %p60_p3 = scmp.ne.s32.totalorder %s588_s13, %s584_s12  ;;  %p61_p4 = scmp.eq.s32.totalorder %s648_s16, 0 }
   0xa   : > { %s664_s21 = scalar_select %p45_p1, %s592_s14, %s47_s19  }
   0xb   : > { %p666_p5 = por %p55_p2, %p54_p0  ;;  %p670_p6 = por %p61_p4, %p60_p3 }
   0xc   : > { %p105_p7 = scmp.eq.s32.totalorder %s648_s16, 1  ;;  %p111_p8 = scmp.eq.s32.totalorder %s409_s17, 1 }
   0xd   : > { %p449_p10 = scmp.lt.s32.totalorder %s596_s15, 2  ;;  %s137_s26 = sand.u32 1, %s592_s14  }
   0xe   : > { %p677_p11 = por %p105_p7, %p54_p0  ;;  %p681_p12 = por %p111_p8, %p60_p3 }
   0xf   : > { %s431_s27 = sshll.u32 %s596_s15, 7  ;;  %s412_s28 = sshll.u32 %s137_s26, 5 }
  0x10   : > { %s817_s24 = scalar_select %p677_p11, 1, 0 }
  0x11   : > { %s818_s25 = scalar_select %p681_p12, 1, 0 }
  0x12   : > { %s690_s4 = scalar_lea.hbm %s811_s1, %s431_s27  ;;  %s141_s5 = scalar_lea.vmem [#allocation2], %s412_s28 }
  0x13   : > { %s148_s6 = sshll.u32 %s141_s5, 4  ;;  %p694_p13 = pnand %p449_p10, %p666_p5  ;;  %s698_s6 = int_to_ptr.vmem [resolvable:$true] %s148_s6 }
  0x14   : > { %s701_s8 = scalar_lea.sflag [#allocation3], %s137_s26  ;;  %s500_s9 = scalar_lea.hbm %s690_s4, 512 }
  0x15   : > { %p501_p1 = scmp.ne.s32.totalorder %s690_s4, %s500_s9  ;;  %p502_p2 = pneg %p694_p13 }
  0x16   : > { %s505_s17 = scalar_lea.hbm %s811_s1, 1024  ;;  %p506_p5 = scmp.lt.u32.totalorder %s690_s4, %s811_s1 }
  0x17   : > { %p503_p3 = pnand %p502_p2, %p501_p1  ;;  %p507_p7 = scmp.lt.u32.totalorder %s505_s17, %s500_s9 }
  0x18   : > { %p509_p10 = scmp.lt.u32.totalorder %s500_s9, %s690_s4 }
  0x19   : > { %p504_p4 = pneg %p503_p3  ;;  %p508_p8 = por %p507_p7, %p506_p5 }
  0x1b   : > { %p510_p9 = por %p509_p10, %p508_p8 }
  0x1d   : > { %p511_p0 = pnand %p510_p9, %p504_p4 }
  0x1f   : > { %514 = shalt.err (!%p511_p0)
}
  0x20   : > { %s515_s22 = scalar_lea.vmem %s698_s6, 512  ;;  %s598_s26 = smov [#allocation2]  }
  0x21   : > { %p516_p1 = scmp.ne.s32.totalorder %s698_s6, %s515_s22  ;;  %s520_s27 = sshll.u32 %s598_s26, 4  ;;  %s521_s27 = int_to_ptr.vmem [resolvable:$false] %s520_s27 }
  0x22   : > { %s522_s28 = scalar_lea.vmem %s521_s27, 1024  ;;  %p523_p11 = scmp.lt.s32.totalorder %s698_s6, %s521_s27 }
  0x23   : > { %p518_p3 = pnand %p516_p1, %p502_p2  ;;  %p524_p5 = scmp.lt.s32.totalorder %s522_s28, %s515_s22 }
  0x25   : > { %p519_p12 = pneg %p518_p3  ;;  %p525_p7 = por %p524_p5, %p523_p11 }
  0x27   : > { %p526_p8 = pnand %p525_p7, %p519_p12 }
  0x29   : > { %529 = shalt.err (!%p526_p8)
}
  0x2a   : > { %s599_s29 = smov 256   ;;  %s600_s30 = smov 128  }
  0x2b   : > { %s601_s5 = smov 8   ;;  %p156_p9 = scmp.lt.s32.totalorder %s596_s15, 3 }
  0x2c   : > { %444 = dma.hbm_to_vmem [thread:$0]  (!%p694_p13), %s690_s4, 512, %s698_s6, %s701_s8, %s599_s29, %s600_s30, %s601_s5  }
  0x2d   : > { %p820_p0 = scmp.ge.s32.totalorder %s596_s15, 1 }
  0x2f   : > { %p157_p2 = pnand %p820_p0, %p156_p9 }
  0x30   : > { %s733_s9 = sand.u32 (!%p157_p2), 1, %s588_s13  }
  0x31   : > { %160 = sbr.rel (%p157_p2) target bundleno = 301 (0x12d), region = 32  ;;  %s416_s10 = sshll.u32 (!%p157_p2), %s733_s9, 5 }
  0x32   : > { %s163_s11 = scalar_lea.sflag (!%p157_p2), [#allocation3], %s733_s9  ;;  %s166_s17 = scalar_lea.vmem (!%p157_p2), [#allocation2], %s416_s10 }
  0x38   : > { %575 = dma.done.wait (%p670_p6), %s163_s11, 512  }
  0x39   : > { %577 = vsyncadd (%p670_p6), %s163_s11, 4294966784  ;;  %v602_v0 = vmov 0   ;;  %v492_v1 = vld [vmem:[%s166_s17 + $0x4] ss:$8 sps:$4 sm:$0xff]   ;;  %v494_v2 = vld [vmem:[%s166_s17] ss:$8 sps:$4 sm:$0xff]  }
  0x3a   : > { %293 = vmatprep.mubr.bf16.mxu0 %v602_v0  ;;  %303 = vmatprep.mubr.bf16.mxu1 %v602_v0  ;;  %v495_v3 = vld [vmem:[%s166_s17 + $0x14] ss:$8 sps:$4 sm:$0xff]   ;;  %v497_v4 = vld [vmem:[%s166_s17 + $0x10] ss:$8 sps:$4 sm:$0xff]   ;;  %v200_v6 = vld [vmem:[%s812_s2] sm:$0xff]  ;;  %vm254_vm0 = vcmask 261120  }
  0x3b   : > { %491 = vset.pattern.permute.xlu1 %v602_v0  ;;  %490 = vset.pattern.permute.xlu0 %v602_v0  ;;  %v202_v5 = vld [vmem:[%s812_s2 + $0x10] sm:$0xff]  ;;  %v498_v7 = vld [vmem:[%s810_s0] sm:$0xff]   ;;  %v499_v8 = vld [vmem:[%s810_s0 + $0x8] sm:$0xff]   ;;  %s417_s30 = sshll.u32 %s733_s9, 6  ;;  %s432_s11 = sshll.u32 %s648_s16, 8 }
  0x3c   : > { %261 = vmatprep.subr.bf16.mxu0 %v492_v1  ;;  %433 = vmatprep.subr.bf16.mxu1 %v492_v1  ;;  %v203_v9 = vld [vmem:[%s812_s2 + $0x18] sm:$0xff]  ;;  %v201_v10 = vld [vmem:[%s812_s2 + $0x8] sm:$0xff]  ;;  %s188_s5 = scalar_lea.vmem [#allocation5], %s417_s30  ;;  %s766_s4 = scalar_lea.hbm %s813_s3, %s432_s11 }
  0x3d   : > { %262 = vmatpush1.bf16.msra.mxu0 %v494_v2  ;;  %435 = vmatpush1.bf16.msra.mxu1 %v494_v2  ;;  %s336_s10 = sshll.u32 %s188_s5, 4  ;;  %s323_s6 = scalar_lea.sflag [#allocation4], %s733_s9  ;;  %s761_s10 = int_to_ptr.vmem [resolvable:$true] %s336_s10 }
  0x3e   : > { %263 = vmatprep.subr.bf16.mxu0 %v495_v3  ;;  %434 = vmatprep.subr.bf16.mxu1 %v495_v3  ;;  %s530_s23 = scalar_lea.vmem %s761_s10, 1024  ;;  %p821_p11 = scmp.ne.s32.totalorder %s817_s24, 0 }
  0x3f   : > { %216 = vperm.xlu1 %491, %v202_v5   ;;  %206 = vperm.xlu0 %490, %v200_v6   ;;  %p531_p6 = scmp.ne.s32.totalorder %s761_s10, %s530_s23  ;;  %s603_s7 = smov [#allocation5]  }
  0x40   : > { %s534_s8 = sshll.u32 %s603_s7, 4  ;;  %s535_s8 = int_to_ptr.vmem [resolvable:$false] %s534_s8 }
  0x41   : > { %264 = vmatpush1.bf16.msra.mxu0 %v497_v4  ;;  %436 = vmatpush1.bf16.msra.mxu1 %v497_v4  ;;  %p532_p12 = pnand %p531_p6, %p821_p11  ;;  %s536_s19 = scalar_lea.vmem %s535_s8, 2048 }
  0x42   : > { %p537_p4 = scmp.lt.s32.totalorder %s761_s10, %s535_s8  ;;  %p538_p10 = scmp.lt.s32.totalorder %s536_s19, %s530_s23 }
  0x43   : > { %221 = vperm.xlu1 %491, %v203_v9   ;;  %211 = vperm.xlu0 %490, %v201_v10   ;;  %p533_p13 = pneg %p532_p12 }
  0x44   : > { %424 = vmatmul.mubr.msk.bf16.vlgmr.msra.gmra.mrb[0].mxu0 %vm254_vm0, %v498_v7  ;;  %425 = vmatmul.mubr.msk.bf16.vlgmr.msra.gmra.mrb[0].mxu1 %vm254_vm0, %v499_v8  ;;  %p539_p1 = por %p538_p10, %p537_p4 }
  0x46   : > { %p540_p3 = pnand %p539_p1, %p533_p13 }
  0xbe   : > { %v217_v11 = vpop.permute.xlu1 %216  ;;  %v207_v12 = vpop.permute.xlu0 %206 }
  0xc2   : > { %v222_v13 = vpop.permute.xlu1 %221  ;;  %v212_v14 = vpop.permute.xlu0 %211 }
 0x117   : > { %v295_v15 = vpop.f32.mrb[0].mxu0  ;;  %v305_v16 = vpop.f32.mrb[0].mxu1 }
 0x118   : > { %v296_v17 = vadd.f32 %v295_v15, %v207_v12  ;;  %v306_v18 = vadd.f32 %v305_v16, %v217_v11  ;;  %v297_v19 = vpop.f32.mrb[1].mxu0  ;;  %v307_v20 = vpop.f32.mrb[1].mxu1 }
 0x119   : > { %v298_v21 = vadd.f32 %v297_v19, %v207_v12  ;;  %v308_v22 = vadd.f32 %v307_v20, %v217_v11  ;;  %v299_v23 = vpop.f32.mrb[2].mxu0  ;;  %v309_v24 = vpop.f32.mrb[2].mxu1 }
 0x11a   : > { %314 = vst [vmem:[%s188_s5] sm:$0xff] %v296_v17  ;;  %318 = vst [vmem:[%s188_s5 + $0x20] sm:$0xff] %v306_v18  ;;  %v300_v25 = vadd.f32 %v299_v23, %v212_v14  ;;  %v310_v26 = vadd.f32 %v309_v24, %v222_v13  ;;  %v301_v27 = vpop.f32.mrb[3].mxu0  ;;  %v311_v28 = vpop.f32.mrb[3].mxu1 }
 0x11b   : > { %315 = vst [vmem:[%s188_s5 + $0x8] sm:$0xff] %v298_v21  ;;  %319 = vst [vmem:[%s188_s5 + $0x28] sm:$0xff] %v308_v22  ;;  %v302_v29 = vadd.f32 %v301_v27, %v212_v14  ;;  %v312_v30 = vadd.f32 %v311_v28, %v222_v13 }
 0x11c   : > { %316 = vst [vmem:[%s188_s5 + $0x10] sm:$0xff] %v300_v25  ;;  %320 = vst [vmem:[%s188_s5 + $0x30] sm:$0xff] %v310_v26 }
 0x11d   : > { %317 = vst [vmem:[%s188_s5 + $0x18] sm:$0xff] %v302_v29  ;;  %321 = vst [vmem:[%s188_s5 + $0x38] sm:$0xff] %v312_v30 }
 0x11e   : > { %543 = shalt.err (!%p540_p3)
}
 0x11f   : > { %s544_s20 = scalar_lea.hbm %s766_s4, 1024  ;;  %s548_s27 = scalar_lea.hbm %s813_s3, 2048 }
 0x120   : > { %p545_p5 = scmp.ne.s32.totalorder %s766_s4, %s544_s20  ;;  %p549_p9 = scmp.lt.u32.totalorder %s766_s4, %s813_s3 }
 0x121   : > { %p550_p0 = scmp.lt.u32.totalorder %s548_s27, %s544_s20  ;;  %p552_p6 = scmp.lt.u32.totalorder %s544_s20, %s766_s4 }
 0x122   : > { %p546_p7 = pnand %p545_p5, %p821_p11 }
 0x123   : > { %p551_p2 = por %p550_p0, %p549_p9 }
 0x124   : > { %p547_p8 = pneg %p546_p7 }
 0x125   : > { %p553_p12 = por %p552_p6, %p551_p2 }
 0x127   : > { %p554_p13 = pnand %p553_p12, %p547_p8 }
 0x129   : > { %557 = shalt.err (!%p554_p13)
}
 0x12a   : > { %s604_s30 = smov 256   ;;  %s605_s5 = smov 512  }
 0x12b   : > { %s606_s11 = smov 16  }
 0x12c   : > { %439 = dma.vmem_to_hbm [thread:$0]  (%p821_p11), %s761_s10, 1024, %s766_s4, %s323_s6, %s604_s30, %s605_s5, %s606_s11  }
 0x12d PF: > { %s351_s16 = sand.u32 1, %s584_s12   ;;  %p822_p4 = scmp.ne.s32.totalorder %s818_s25, 0 }
 0x12e   : > { %p823_p10 = scmp.ge.s32.totalorder %s596_s15, 2  ;;  %s352_s17 = scalar_lea.sflag [#allocation4], %s351_s16 }
 0x130   : > { %p446_p1 = pnand %p823_p10, %p822_p4 }
 0x132   : > { %579 = dma.done.wait (!%p446_p1), %s352_s17, 1024  }
 0x133   : > { %581 = vsyncadd (!%p446_p1), %s352_s17, 4294966272  ;;  %p16_p3 = scmp.ge.s32.totalorder %s652_s18, 4   ;;  %s824_s12 = smov %s588_s13 }
 0x134   : > { %s825_s13 = smov %s592_s14  ;;  %s826_s14 = smov %s664_s21 }
 0x135   : > { %s827_s15 = smov %s652_s18  ;;  %18 = sbr.rel (!%p16_p3) target bundleno = 5 (0x5), region = 77 }
 0x13c   :  { %357 = vsyncpa [#allocation3], 1 }
 0x13d   :  { %359 = vsyncpa [#allocation3 + $0x1], 1 }
 0x13e   :  { %360 = vsyncpa [#allocation4], 1 }
 0x13f   :  { %362 = vsyncpa [#allocation4 + $0x1], 1 }

</bundles_post_ra>
